<compile_context>
chip_gen: v7x
topology: tpu7x:2x2x1
jax: 0.10.0
libtpu: 0.0.40
codegen_flags: <defaults>
</compile_context>

<pallas_src>
from typing import NamedTuple

import jax
import jax.numpy as jnp
from jax.experimental import pallas as pl
from jax.experimental.pallas import tpu as pltpu


def _round_up(n, m):
    return ((n + m - 1) // m) * m


def _actor_kernel(scale_ref, x_ref, w1_ref, b1_ref, w2_ref, b2_ref,
                  w3_ref, b3_ref, o_ref):
    # In-kernel f32 -> bf16 cast of the state tile (saves an HBM round trip).
    # NOTE: if tighter accuracy on badly-scaled observations is needed, layer 1
    # could keep an f32 LHS at negligible cost (17x512 matmul).
    x = x_ref[...].astype(jnp.bfloat16)
    # l1 + ReLU  (bf16 matmul inputs, f32 accumulate; bias/ReLU in f32)
    h1 = jnp.dot(x, w1_ref[...], preferred_element_type=jnp.float32)
    h1 = jnp.maximum(h1 + b1_ref[...], 0.0)
    # l2 + ReLU
    h2 = jnp.dot(h1.astype(jnp.bfloat16), w2_ref[...],
                 preferred_element_type=jnp.float32)
    h2 = jnp.maximum(h2 + b2_ref[...], 0.0)
    # l3 + tanh, scaled by max_action (SMEM scalar); bf16 cast on store.
    h3 = jnp.dot(h2.astype(jnp.bfloat16), w3_ref[...],
                 preferred_element_type=jnp.float32)
    o_ref[...] = (scale_ref[0, 0] * jnp.tanh(h3 + b3_ref[...])).astype(
        o_ref.dtype)


class PreparedActorParams(NamedTuple):
    w1: jax.Array   # [state_dim, H1]  bf16
    b1: jax.Array   # [1, H1]          f32
    w2: jax.Array   # [H1, H2]         bf16
    b2: jax.Array   # [1, H2]          f32
    w3: jax.Array   # [H2, ACT_PAD]    bf16
    b3: jax.Array   # [1, ACT_PAD]     f32
    action_dim: int


def prepare_actor_params(params):
    """One-time prep: zero-pad hidden/action dims to lane multiples and cast
    weights to bf16.  Do this when params change, not per forward call."""
    w1, b1, w2, b2, w3, b3 = params
    h1_dim, h2_dim, action_dim = w1.shape[1], w2.shape[1], w3.shape[1]
    H1 = _round_up(h1_dim, 128)                 # 400 -> 512
    H2 = _round_up(h2_dim, 128)                 # 300 -> 384
    ACT = max(128, _round_up(action_dim, 128))  # e.g. 6 -> 128

    w1p = jnp.pad(w1, ((0, 0), (0, H1 - h1_dim)))
    b1p = jnp.pad(b1, ((0, 0), (0, H1 - h1_dim)))
    w2p = jnp.pad(w2, ((0, H1 - h1_dim), (0, H2 - h2_dim)))
    b2p = jnp.pad(b2, ((0, 0), (0, H2 - h2_dim)))
    w3p = jnp.pad(w3, ((0, H2 - h2_dim), (0, ACT - action_dim)))
    b3p = jnp.pad(b3, ((0, 0), (0, ACT - action_dim)))

    return PreparedActorParams(
        w1=w1p.astype(jnp.bfloat16), b1=b1p.astype(jnp.float32),
        w2=w2p.astype(jnp.bfloat16), b2=b2p.astype(jnp.float32),
        w3=w3p.astype(jnp.bfloat16), b3=b3p.astype(jnp.float32),
        action_dim=action_dim)


def actor_forward(x, prepared: PreparedActorParams, max_action, *,
                  batch_tile=1024):
    """x: [B, state_dim] float32. Returns [B, action_dim] bfloat16."""
    B, state_dim = x.shape
    H1 = prepared.w1.shape[1]
    H2 = prepared.w2.shape[1]
    ACT_PAD = prepared.w3.shape[1]
    action_dim = prepared.action_dim

    # --- batch tiling: pad B up to a multiple of TB (TB multiple of 8).
    # For B >= 512 always make >=2 tiles so both v7x TensorCores get work.
    TB = batch_tile
    if B <= TB:
        if B >= 512:
            TB = max(256, _round_up(pl.cdiv(B, 2), 8))
        else:
            TB = max(8, _round_up(B, 8))
    n_tiles = pl.cdiv(B, TB)
    B_pad = n_tiles * TB
    if B_pad != B:
        x = jnp.pad(x, ((0, B_pad - B), (0, 0)))

    # max_action as a (1,1) SMEM scalar (no recompile when it changes).
    scale = jnp.asarray(max_action, jnp.float32).reshape(1, 1)

    flops = 2 * B_pad * (state_dim * H1 + H1 * H2 + H2 * ACT_PAD)
    bytes_accessed = (x.size * 4
                      + prepared.w1.size * 2 + prepared.w2.size * 2
                      + prepared.w3.size * 2
                      + prepared.b1.size * 4 + prepared.b2.size * 4
                      + prepared.b3.size * 4
                      + B_pad * ACT_PAD * 2)
    cost = pl.CostEstimate(flops=flops, transcendentals=B_pad * ACT_PAD,
                           bytes_accessed=bytes_accessed)

    args = (scale, x, prepared.w1, prepared.b1, prepared.w2, prepared.b2,
            prepared.w3, prepared.b3)

    if n_tiles == 1:
        # Single-tile (small batch) fast path: no grid, no pipeline setup.
        vmem = lambda: pl.BlockSpec(memory_space=pltpu.MemorySpace.VMEM)
        out = pl.pallas_call(
            _actor_kernel,
            out_shape=jax.ShapeDtypeStruct((B_pad, ACT_PAD), jnp.bfloat16),
            in_specs=[
                pl.BlockSpec(memory_space=pltpu.MemorySpace.SMEM),  # scale
                vmem(),                                             # x
                vmem(), vmem(), vmem(), vmem(), vmem(), vmem(),     # params
            ],
            out_specs=pl.BlockSpec(memory_space=pltpu.MemorySpace.VMEM),
            cost_estimate=cost,
        )(*args)
    else:
        # Batch-tiled path: x/out blocked over the batch; weights stay
        # VMEM-resident (constant block index) across grid steps.
        full = lambda a: pl.BlockSpec(a.shape, lambda i: (0,) * a.ndim)
        out = pl.pallas_call(
            _actor_kernel,
            out_shape=jax.ShapeDtypeStruct((B_pad, ACT_PAD), jnp.bfloat16),
            grid=(n_tiles,),
            in_specs=[
                pl.BlockSpec(memory_space=pltpu.MemorySpace.SMEM),  # scale
                pl.BlockSpec((TB, state_dim), lambda i: (i, 0)),    # x tile
                full(prepared.w1), full(prepared.b1),
                full(prepared.w2), full(prepared.b2),
                full(prepared.w3), full(prepared.b3),
            ],
            out_specs=pl.BlockSpec((TB, ACT_PAD), lambda i: (i, 0)),
            compiler_params=pltpu.CompilerParams(
                dimension_semantics=("parallel",)),
            cost_estimate=cost,
        )(*args)

    # TODO(synk): for latency-critical B<=8 acting loops, keep the ~0.5 MB of
    # bf16 weights VMEM-resident across calls (P10 cross-call prefetch with
    # SEMAPHORE/VMEM outputs) instead of re-DMA-ing them every invocation.
    return out[:B, :action_dim]


def init_actor_params(key, state_dim, action_dim):
    """Deterministic PyTorch-style (uniform +/- 1/sqrt(fan_in)) init."""
    def linear(key, fan_in, fan_out):
        kw, kb = jax.random.split(key)
        bound = 1.0 / jnp.sqrt(jnp.float32(fan_in))
        # stored as [in, out] so forward is x @ W + b
        w = jax.random.uniform(kw, (fan_in, fan_out), jnp.float32,
                               minval=-bound, maxval=bound)
        b = jax.random.uniform(kb, (1, fan_out), jnp.float32,
                               minval=-bound, maxval=bound)
        return w, b

    k1, k2, k3 = jax.random.split(key, 3)
    w1, b1 = linear(k1, state_dim, 400)
    w2, b2 = linear(k2, 400, 300)
    w3, b3 = linear(k3, 300, action_dim)
    return (w1, b1, w2, b2, w3, b3)


if __name__ == "__main__":
    key = jax.random.PRNGKey(0)
    k_params, k_x1, k_x2 = jax.random.split(key, 3)

    state_dim = 17       # e.g. MuJoCo-like observation dim
    action_dim = 6
    max_action = 1.0

    params = init_actor_params(k_params, state_dim, action_dim)
    prepared = prepare_actor_params(params)
    w1, b1, w2, b2, w3, b3 = params

    def ref_bf16(x):
        # bf16-matched pure-JAX reference (same mixed-precision recipe)
        xb = x.astype(jnp.bfloat16)
        h = jnp.maximum(jnp.dot(xb, w1.astype(jnp.bfloat16),
                                preferred_element_type=jnp.float32) + b1, 0.0)
        h = jnp.maximum(jnp.dot(h.astype(jnp.bfloat16), w2.astype(jnp.bfloat16),
                                preferred_element_type=jnp.float32) + b2, 0.0)
        return max_action * jnp.tanh(
            jnp.dot(h.astype(jnp.bfloat16), w3.astype(jnp.bfloat16),
                    preferred_element_type=jnp.float32) + b3)

    def ref_f32(x):
        h = jnp.maximum(x @ w1 + b1, 0.0)
        h = jnp.maximum(h @ w2 + b2, 0.0)
        return max_action * jnp.tanh(h @ w3 + b3)

    # --- small batch: exercises the grid-less fast path -------------------
    x_small = jax.random.normal(k_x1, (2, state_dim), jnp.float32)
    out_small = jax.block_until_ready(
        actor_forward(x_small, prepared, max_action))
    assert out_small.shape == (2, action_dim)
    o = out_small.astype(jnp.float32)
    assert jnp.allclose(o, ref_bf16(x_small), atol=1e-2, rtol=1e-2), \
        "small-batch mismatch vs bf16-matched reference"
    assert jnp.allclose(o, ref_f32(x_small), atol=5e-2, rtol=5e-2), \
        "small-batch mismatch vs f32 reference"

    # --- mid batch: exercises the tiled grid path (>=2 tiles) -------------
    x_mid = jax.random.normal(k_x2, (600, state_dim), jnp.float32)
    out_mid = jax.block_until_ready(
        actor_forward(x_mid, prepared, max_action))
    assert out_mid.shape == (600, action_dim)
    o = out_mid.astype(jnp.float32)
    assert jnp.allclose(o, ref_bf16(x_mid), atol=1e-2, rtol=1e-2), \
        "mid-batch mismatch vs bf16-matched reference"
    assert jnp.allclose(o, ref_f32(x_mid), atol=5e-2, rtol=5e-2), \
        "mid-batch mismatch vs f32 reference"

    print("KERNEL_OK")
</pallas_src>

<mosaic_0001>
module attributes {stable_mosaic.version = 11 : i64} {
  func.func @_actor_kernel(%arg0: memref<1x1xf32, #tpu.memory_space<smem>>, %arg1: memref<8x17xf32, #tpu.memory_space<vmem>>, %arg2: memref<17x512xbf16, #tpu.memory_space<vmem>>, %arg3: memref<1x512xf32, #tpu.memory_space<vmem>>, %arg4: memref<512x384xbf16, #tpu.memory_space<vmem>>, %arg5: memref<1x384xf32, #tpu.memory_space<vmem>>, %arg6: memref<384x128xbf16, #tpu.memory_space<vmem>>, %arg7: memref<1x128xf32, #tpu.memory_space<vmem>>, %arg8: memref<8x128xbf16, #tpu.memory_space<vmem>>) attributes {dimension_semantics = [], scalar_prefetch = 0 : i64, scratch_operands = 0 : i64, tpu.core_type = #tpu.core_type<tc>} {
    %c0 = arith.constant 0 : index
    %c0_0 = arith.constant 0 : index
    %0 = vector.load %arg1[%c0, %c0_0] : memref<8x17xf32, #tpu.memory_space<vmem>>, vector<8x17xf32>
    %1 = arith.truncf %0 : vector<8x17xf32> to vector<8x17xbf16>
    %c0_1 = arith.constant 0 : index
    %c0_2 = arith.constant 0 : index
    %2 = vector.load %arg2[%c0_1, %c0_2] : memref<17x512xbf16, #tpu.memory_space<vmem>>, vector<17x512xbf16>
    %cst = arith.constant dense<0.000000e+00> : vector<8x512xf32>
    %3 = tpu.matmul %1, %2, %cst {dimension_numbers = #tpu.dot_dimension_numbers<[1], [0], [0], [1], [0, 0, 1, 1], [], []>} : vector<8x17xbf16>, vector<17x512xbf16>, vector<8x512xf32> -> vector<8x512xf32>
    %c0_3 = arith.constant 0 : index
    %c0_4 = arith.constant 0 : index
    %4 = vector.load %arg3[%c0_3, %c0_4] : memref<1x512xf32, #tpu.memory_space<vmem>>, vector<1x512xf32>
    %5 = vector.broadcast %4 : vector<1x512xf32> to vector<8x512xf32>
    %6 = arith.addf %3, %5 : vector<8x512xf32>
    %cst_5 = arith.constant 0.000000e+00 : f32
    %7 = vector.broadcast %cst_5 : f32 to vector<8x512xf32>
    %8 = arith.maximumf %6, %7 : vector<8x512xf32>
    %9 = arith.truncf %8 : vector<8x512xf32> to vector<8x512xbf16>
    %c0_6 = arith.constant 0 : index
    %c0_7 = arith.constant 0 : index
    %10 = vector.load %arg4[%c0_6, %c0_7] : memref<512x384xbf16, #tpu.memory_space<vmem>>, vector<512x384xbf16>
    %cst_8 = arith.constant dense<0.000000e+00> : vector<8x384xf32>
    %11 = tpu.matmul %9, %10, %cst_8 {dimension_numbers = #tpu.dot_dimension_numbers<[1], [0], [0], [1], [0, 0, 1, 1], [], []>} : vector<8x512xbf16>, vector<512x384xbf16>, vector<8x384xf32> -> vector<8x384xf32>
    %c0_9 = arith.constant 0 : index
    %c0_10 = arith.constant 0 : index
    %12 = vector.load %arg5[%c0_9, %c0_10] : memref<1x384xf32, #tpu.memory_space<vmem>>, vector<1x384xf32>
    %13 = vector.broadcast %12 : vector<1x384xf32> to vector<8x384xf32>
    %14 = arith.addf %11, %13 : vector<8x384xf32>
    %cst_11 = arith.constant 0.000000e+00 : f32
    %15 = vector.broadcast %cst_11 : f32 to vector<8x384xf32>
    %16 = arith.maximumf %14, %15 : vector<8x384xf32>
    %17 = arith.truncf %16 : vector<8x384xf32> to vector<8x384xbf16>
    %c0_12 = arith.constant 0 : index
    %c0_13 = arith.constant 0 : index
    %18 = vector.load %arg6[%c0_12, %c0_13] : memref<384x128xbf16, #tpu.memory_space<vmem>>, vector<384x128xbf16>
    %cst_14 = arith.constant dense<0.000000e+00> : vector<8x128xf32>
    %19 = tpu.matmul %17, %18, %cst_14 {dimension_numbers = #tpu.dot_dimension_numbers<[1], [0], [0], [1], [0, 0, 1, 1], [], []>} : vector<8x384xbf16>, vector<384x128xbf16>, vector<8x128xf32> -> vector<8x128xf32>
    %c0_15 = arith.constant 0 : index
    %c0_16 = arith.constant 0 : index
    %20 = memref.load %arg0[%c0_15, %c0_16] : memref<1x1xf32, #tpu.memory_space<smem>>
    %c0_17 = arith.constant 0 : index
    %c0_18 = arith.constant 0 : index
    %21 = vector.load %arg7[%c0_17, %c0_18] : memref<1x128xf32, #tpu.memory_space<vmem>>, vector<1x128xf32>
    %22 = vector.broadcast %21 : vector<1x128xf32> to vector<8x128xf32>
    %23 = arith.addf %19, %22 : vector<8x128xf32>
    %24 = math.tanh %23 : vector<8x128xf32>
    %25 = vector.broadcast %20 : f32 to vector<8x128xf32>
    %26 = arith.mulf %25, %24 : vector<8x128xf32>
    %27 = arith.truncf %26 : vector<8x128xf32> to vector<8x128xbf16>
    %c0_19 = arith.constant 0 : index
    %c0_20 = arith.constant 0 : index
    %28 = vector.load %arg8[%c0_19, %c0_20] : memref<8x128xbf16, #tpu.memory_space<vmem>>, vector<8x128xbf16>
    tpu.vector_store %arg8[%c0_19, %c0_20], %27 {strides = array<i32>} : memref<8x128xbf16, #tpu.memory_space<vmem>>, vector<8x128xbf16>,
    return
  }
}

</mosaic_0001>

<bundles_post_ra>
// kernel: tpu_custom_call.1
= control target key start
LH: loop header
LB: loop body
LE: loop exit
PB: predicated region body
PF: predicated region fallthrough
CT: control target
= control target key end

     0   :  { %14 = vsyncpa [#allocation4], 0  ;;  %s2067_s0 = inlined_call_operand.<no memory space> [shape: f32[1,1], index: 0, kind: input, shape index: {}]   ;;  %s2068_s1 = inlined_call_operand.hbm [shape: f32[8,17], index: 1, kind: input, shape index: {}]   ;;  %s2069_s2 = inlined_call_operand.hbm [shape: bf16[17,512], index: 2, kind: input, shape index: {}]   ;;  %s2070_s3 = inlined_call_operand.vmem [shape: f32[1,512], index: 3, kind: input, shape index: {}]   ;;  %s2071_s4 = inlined_call_operand.hbm [shape: bf16[512,384], index: 4, kind: input, shape index: {}]   ;;  %s2072_s5 = inlined_call_operand.vmem [shape: f32[1,384], index: 5, kind: input, shape index: {}]   ;;  %s2073_s6 = inlined_call_operand.hbm [shape: bf16[384,128], index: 6, kind: input, shape index: {}]   ;;  %s2074_s7 = inlined_call_operand.vmem [shape: f32[1,128], index: 7, kind: input, shape index: {}]   ;;  %s2075_s8 = inlined_call_operand.hbm [shape: bf16[8,128], index: 8, kind: output, shape index: {}]  }
   0x1   :  { %15 = vsyncpa [#allocation7], 0 }
   0x2   :  { %16 = vsyncpa [#allocation10], 0 }
   0x3   :  { %17 = vsyncpa [#allocation5], 0  ;;  %s1909_s27 = smov [#allocation6]   ;;  %s1791_s9 = scalar_lea.hbm %s2069_s2, 768 }
   0x4   :  { %s35_s28 = sshll.u32 %s1909_s27, 4  ;;  %p1792_p0 = scmp.ne.s32.totalorder %s2069_s2, %s1791_s9  ;;  %s36_s28 = int_to_ptr.vmem [resolvable:$true] %s35_s28 }
   0x5   :  { %p1795_p1 = scmp.lt.u32.totalorder %s1791_s9, %s2069_s2 }
   0x7   :  { %p1797_p2 = pnand %p1795_p1, %p1792_p0 }
   0x9   :  { %1800 = shalt.err (!%p1797_p2)
}
   0xa   :  { %s1801_s14 = scalar_lea.vmem %s36_s28, 768  ;;  %p1806_p4 = scmp.lt.s32.totalorder %s36_s28, %s36_s28 }
   0xb   :  { %p1802_p3 = scmp.ne.s32.totalorder %s36_s28, %s1801_s14  ;;  %p1807_p5 = scmp.lt.s32.totalorder %s1801_s14, %s1801_s14 }
   0xd   :  { %p1808_p6 = por %p1807_p5, %p1806_p4 }
   0xf   :  { %p1809_p7 = pnand %p1808_p6, %p1802_p3 }
  0x11   :  { %1812 = shalt.err (!%p1809_p7)
}
  0x12   :  { %s1910_s15 = smov 256   ;;  %s1911_s16 = smov 16  }
  0x13   :  { %41 = dma.hbm_to_vmem [thread:$0]  %s2069_s2, 768, %s36_s28, [#allocation7], %s1910_s15, %s1910_s15, %s1911_s16  }
  0x14   :  { %s1912_s19 = smov [#allocation3]   ;;  %s1913_s21 = smov [#allocation8]  }
  0x15   :  { %s26_s20 = sshll.u32 %s1912_s19, 4  ;;  %s49_s22 = sshll.u32 %s1913_s21, 4  ;;  %s27_s20 = int_to_ptr.vmem [resolvable:$true] %s26_s20  ;;  %s50_s22 = int_to_ptr.vmem [resolvable:$true] %s49_s22 }
  0x16   :  { %s1813_s25 = scalar_lea.hbm %s2068_s1, 128 }
  0x17   :  { %p1814_p8 = scmp.ne.s32.totalorder %s2068_s1, %s1813_s25  ;;  %p1817_p9 = scmp.lt.u32.totalorder %s1813_s25, %s2068_s1 }
  0x19   :  { %p1819_p10 = pnand %p1817_p9, %p1814_p8 }
  0x1b   :  { %1822 = shalt.err (!%p1819_p10)
}
  0x1c   :  { %s1823_s2 = scalar_lea.vmem %s27_s20, 128  ;;  %p1828_p12 = scmp.lt.s32.totalorder %s27_s20, %s27_s20 }
  0x1d   :  { %p1824_p11 = scmp.ne.s32.totalorder %s27_s20, %s1823_s2  ;;  %p1829_p13 = scmp.lt.s32.totalorder %s1823_s2, %s1823_s2 }
  0x1f   :  { %p1830_p0 = por %p1829_p13, %p1828_p12 }
  0x21   :  { %p1831_p1 = pnand %p1830_p0, %p1824_p11 }
  0x23   :  { %1834 = shalt.err (!%p1831_p1)
}
  0x24   :  { %29 = dma.hbm_to_vmem [thread:$0]  %s2068_s1, 128, %s27_s20, [#allocation4]  }
  0x25   :  { %s1835_s12 = scalar_lea.hbm %s2071_s4, 12288 }
  0x26   :  { %p1836_p2 = scmp.ne.s32.totalorder %s2071_s4, %s1835_s12  ;;  %p1839_p3 = scmp.lt.u32.totalorder %s1835_s12, %s2071_s4 }
  0x28   :  { %p1841_p4 = pnand %p1839_p3, %p1836_p2 }
  0x2a   :  { %1844 = shalt.err (!%p1841_p4)
}
  0x2b   :  { %s1845_s17 = scalar_lea.vmem %s50_s22, 12288  ;;  %p1850_p6 = scmp.lt.s32.totalorder %s50_s22, %s50_s22 }
  0x2c   :  { %p1846_p5 = scmp.ne.s32.totalorder %s50_s22, %s1845_s17  ;;  %p1851_p7 = scmp.lt.s32.totalorder %s1845_s17, %s1845_s17 }
  0x2e   :  { %p1852_p8 = por %p1851_p7, %p1850_p6 }
  0x30   :  { %p1853_p9 = pnand %p1852_p8, %p1846_p5 }
  0x32   :  { %1856 = shalt.err (!%p1853_p9)
}
  0x33   :  { %s1914_s1 = smov 192   ;;  %s1915_s18 = smov 12  }
  0x34   :  { %55 = dma.hbm_to_vmem [thread:$0]  %s2071_s4, 12288, %s50_s22, [#allocation7], %s1914_s1, %s1914_s1, %s1915_s18  }
  0x35   :  { %s1916_s21 = smov [#allocation9]   ;;  %s1857_s26 = scalar_lea.hbm %s2073_s6, 3072 }
  0x36   :  { %s63_s23 = sshll.u32 %s1916_s21, 4  ;;  %p1858_p10 = scmp.ne.s32.totalorder %s2073_s6, %s1857_s26  ;;  %s64_s23 = int_to_ptr.vmem [resolvable:$true] %s63_s23 }
  0x37   :  { %p1861_p11 = scmp.lt.u32.totalorder %s1857_s26, %s2073_s6 }
  0x39   :  { %p1863_p12 = pnand %p1861_p11, %p1858_p10 }
  0x3b   :  { %1866 = shalt.err (!%p1863_p12)
}
  0x3c   :  { %s1867_s28 = scalar_lea.vmem %s64_s23, 3072  ;;  %p1872_p0 = scmp.lt.s32.totalorder %s64_s23, %s64_s23 }
  0x3d   :  { %p1868_p13 = scmp.ne.s32.totalorder %s64_s23, %s1867_s28  ;;  %p1873_p1 = scmp.lt.s32.totalorder %s1867_s28, %s1867_s28 }
  0x3f   :  { %p1874_p2 = por %p1873_p1, %p1872_p0 }
  0x41   :  { %p1875_p3 = pnand %p1874_p2, %p1868_p13 }
  0x43   :  { %1878 = shalt.err (!%p1875_p3)
}
  0x44   :  { %s1917_s4 = smov 64   ;;  %s1918_s22 = smov 4  }
  0x45   :  { %69 = dma.hbm_to_vmem [thread:$0]  %s2073_s6, 3072, %s64_s23, [#allocation10], %s1917_s4, %s1917_s4, %s1918_s22  }
  0x46   :  { %1901 = dma.done.wait [#allocation4], 128  }
  0x47   :  { %1902 = vsyncadd [#allocation4], 4294967168 }
  0x48   :  { %1903 = dma.done.wait [#allocation7], 13056  }
  0x49   :  { %1904 = vsyncadd [#allocation7], 4294954240 }
  0x4a   :  { %1905 = dma.done.wait [#allocation10], 3072  }
  0x4b   :  { %1906 = vsyncadd [#allocation10], 4294964224  ;;  %v1919_v0 = vmov 0   ;;  %vm149_vm0 = vcmask 1040384   ;;  %v1627_v1 = vld [vmem:[#allocation6 + $0x4] ss:$16 sps:$4 sm:$0xff]  }
  0x4c   :  { %196 = vmatprep.mubr.bf16.mxu0 %v1919_v0  ;;  %237 = vmatprep.mubr.bf16.mxu1 %v1919_v0  ;;  %v1629_v2 = vld [vmem:[#allocation6] ss:$16 sps:$4 sm:$0xff]   ;;  %v151_v4 = vsel %vm149_vm0, 65535, %v1919_v0  ;;  %v85_v5 = vld [vmem:[#allocation3] sm:$0xff]  ;;  %v92_v10 = vld [vmem:[#allocation6 + $0x28] sm:$0x11] }
  0x4d   :  { %v91_v3 = vld [vmem:[#allocation6 + $0x20] sm:$0x11]  ;;  %164 = vmatprep.subr.bf16.mxu0 %v1627_v1  ;;  %v1632_v8 = vld [vmem:[#allocation6 + $0xc] ss:$16 sps:$4 sm:$0xff]   ;;  %v1634_v9 = vld [vmem:[#allocation6 + $0x8] ss:$16 sps:$4 sm:$0xff]   ;;  %v1388_v13 = vcombine.high %v92_v10, %v92_v10  ;;  %v1387_v14 = vcombine.low %v92_v10, %v92_v10  ;;  %v86_v16 = vpack.c.bf16 %v85_v5, %v85_v5 }
  0x4e   :  { %v1386_v6 = vcombine.high %v91_v3, %v91_v3  ;;  %v1385_v7 = vcombine.low %v91_v3, %v91_v3  ;;  %165 = vmatpush1.bf16.msra.mxu0 %v1629_v2  ;;  %205 = vmatprep.subr.bf16.mxu1 %v1632_v8  ;;  %v1639_v15 = vld [vmem:[#allocation8 + $0x4] ss:$12 sps:$4 sm:$0xff]   ;;  %vm145_vm1 = vcmask 138240   ;;  %v1637_v19 = vld [vmem:[#allocation8] ss:$12 sps:$4 sm:$0xff]   ;;  %vm1921_vm2 = vmmov 0  }
  0x4f   :  { %206 = vmatpush1.bf16.msra.mxu1 %v1634_v9  ;;  %v162_v17 = vand.u32 %v1388_v13, %v151_v4  ;;  %v159_v18 = vand.u32 %v1387_v14, %v151_v4  ;;  %v1642_v20 = vld [vmem:[#allocation8 + $0x1c] ss:$12 sps:$4 sm:$0xff]   ;;  %v1640_v21 = vld [vmem:[#allocation8 + $0x18] ss:$12 sps:$4 sm:$0xff]   ;;  %v1645_v22 = vld [vmem:[#allocation8 + $0x34] ss:$12 sps:$4 sm:$0xff]  }
  0x50   :  { %v156_v11 = vand.u32 %v1386_v6, %v151_v4  ;;  %v153_v12 = vand.u32 %v1385_v7, %v151_v4  ;;  %v1643_v23 = vld [vmem:[#allocation8 + $0x30] ss:$12 sps:$4 sm:$0xff]   ;;  %v1648_v24 = vld [vmem:[#allocation8 + $0x4c] ss:$12 sps:$4 sm:$0xff]   ;;  %v1664_v25 = vld [vmem:[#allocation8 + $0xc8] ss:$12 sps:$4 sm:$0xff]   ;;  %v95_v4 = vlaneseq }
  0x51   :  { %207 = vmatprep.subr.bf16.mxu1 %v162_v17  ;;  %v1665_v26 = vld [vmem:[#allocation8 + $0x8] ss:$12 sps:$4 sm:$0xff]   ;;  %v1651_v28 = vld [vmem:[#allocation8 + $0x64] ss:$12 sps:$4 sm:$0xff]   ;;  %v1669_v29 = vld [vmem:[#allocation8 + $0xe0] ss:$12 sps:$4 sm:$0xff]  }
  0x52   :  { %166 = vmatprep.subr.bf16.mxu0 %v156_v11  ;;  %v1646_v27 = vld [vmem:[#allocation8 + $0x48] ss:$12 sps:$4 sm:$0xff]   ;;  %v1670_v30 = vld [vmem:[#allocation8 + $0x20] ss:$12 sps:$4 sm:$0xff]   ;;  %v1674_v33 = vld [vmem:[#allocation8 + $0xf8] ss:$12 sps:$4 sm:$0xff]  }
  0x53   :  { %167 = vmatpush1.bf16.msra.mxu0 %v153_v12  ;;  %208 = vmatpush1.bf16.msra.mxu1 %v159_v18  ;;  %v1649_v31 = vld [vmem:[#allocation8 + $0x60] ss:$12 sps:$4 sm:$0xff]   ;;  %v1654_v32 = vld [vmem:[#allocation8 + $0x7c] ss:$12 sps:$4 sm:$0xff]   ;;  %v1675_v34 = vld [vmem:[#allocation8 + $0x38] ss:$12 sps:$4 sm:$0xff]  }
  0x54   :  { %911 = vmatprep.subr.bf16.mxu0 %v1639_v15  ;;  %1512 = vmatprep.subr.bf16.mxu1 %v1664_v25  ;;  %v1652_v35 = vld [vmem:[#allocation8 + $0x78] ss:$12 sps:$4 sm:$0xff]   ;;  %v1679_v36 = vld [vmem:[#allocation8 + $0x110] ss:$12 sps:$4 sm:$0xff]   ;;  %v1657_v38 = vld [vmem:[#allocation8 + $0x94] ss:$12 sps:$4 sm:$0xff]  }
  0x55   :  { %v1680_v37 = vld [vmem:[#allocation8 + $0x50] ss:$12 sps:$4 sm:$0xff]   ;;  %v1684_v39 = vld [vmem:[#allocation8 + $0x128] ss:$12 sps:$4 sm:$0xff]   ;;  %v1660_v42 = vld [vmem:[#allocation8 + $0xac] ss:$12 sps:$4 sm:$0xff]  }
  0x56   :  { %1389 = vmatmul.mubr.msk.bf16.vlgmr.msra.gmra.mrb[0].mxu0 %vm145_vm1, %v86_v16  ;;  %1390 = vmatmul.mubr.msk.bf16.vlgmr.msra.gmra.mrb[0].mxu1 %vm145_vm1, %v86_v16  ;;  %v1655_v40 = vld [vmem:[#allocation8 + $0x90] ss:$12 sps:$4 sm:$0xff]   ;;  %v1685_v41 = vld [vmem:[#allocation8 + $0x68] ss:$12 sps:$4 sm:$0xff]   ;;  %v1689_v44 = vld [vmem:[#allocation8 + $0x140] ss:$12 sps:$4 sm:$0xff]  }
  0x57   :  { %912 = vmatpush1.bf16.msra.mxu0 %v1637_v19  ;;  %1513 = vmatpush3.bf16.msra.mxu1 %v1665_v26  ;;  %v1658_v43 = vld [vmem:[#allocation8 + $0xa8] ss:$12 sps:$4 sm:$0xff]   ;;  %v1663_v45 = vld [vmem:[#allocation8 + $0xc4] ss:$12 sps:$4 sm:$0xff]   ;;  %v1690_v46 = vld [vmem:[#allocation8 + $0x80] ss:$12 sps:$4 sm:$0xff]  }
  0x58   :  { %913 = vmatprep.subr.bf16.mxu0 %v1642_v20  ;;  %1514 = vmatprep.subr.bf16.mxu1 %v1669_v29  ;;  %v1661_v47 = vld [vmem:[#allocation8 + $0xc0] ss:$12 sps:$4 sm:$0xff]   ;;  %v1668_v48 = vld [vmem:[#allocation8 + $0xdc] ss:$12 sps:$4 sm:$0xff]   ;;  %v1666_v49 = vld [vmem:[#allocation8 + $0xd8] ss:$12 sps:$4 sm:$0xff]  }
  0x59   :  { %v1673_v50 = vld [vmem:[#allocation8 + $0xf4] ss:$12 sps:$4 sm:$0xff]   ;;  %v1671_v51 = vld [vmem:[#allocation8 + $0xf0] ss:$12 sps:$4 sm:$0xff]   ;;  %v1678_v52 = vld [vmem:[#allocation8 + $0x10c] ss:$12 sps:$4 sm:$0xff]  }
  0x5a   :  { %v1676_v53 = vld [vmem:[#allocation8 + $0x108] ss:$12 sps:$4 sm:$0xff]   ;;  %v1683_v54 = vld [vmem:[#allocation8 + $0x124] ss:$12 sps:$4 sm:$0xff]   ;;  %v1681_v55 = vld [vmem:[#allocation8 + $0x120] ss:$12 sps:$4 sm:$0xff]  }
  0x5b   :  { %914 = vmatpush1.bf16.msra.mxu0 %v1640_v21  ;;  %1515 = vmatpush3.bf16.msra.mxu1 %v1670_v30  ;;  %v1688_v56 = vld [vmem:[#allocation8 + $0x13c] ss:$12 sps:$4 sm:$0xff]   ;;  %v1686_v57 = vld [vmem:[#allocation8 + $0x138] ss:$12 sps:$4 sm:$0xff]   ;;  %v1693_v58 = vld [vmem:[#allocation8 + $0x154] ss:$12 sps:$4 sm:$0xff]  }
  0x5c   :  { %915 = vmatprep.subr.bf16.mxu0 %v1645_v22  ;;  %1516 = vmatprep.subr.bf16.mxu1 %v1674_v33  ;;  %v1694_v59 = vld [vmem:[#allocation8 + $0x158] ss:$12 sps:$4 sm:$0xff]   ;;  %v1691_v60 = vld [vmem:[#allocation8 + $0x150] ss:$12 sps:$4 sm:$0xff]   ;;  %v1696_v0 = vld [vmem:[#allocation8 + $0x168] ss:$12 sps:$4 sm:$0xff]  }
  0x5d   :  { %v1695_v61 = vld [vmem:[#allocation8 + $0x98] ss:$12 sps:$4 sm:$0xff]   ;;  %v1699_v63 = vld [vmem:[#allocation8 + $0x170] ss:$12 sps:$4 sm:$0xff]   ;;  %v1704_v3 = vld [vmem:[#allocation8 + $0x248] ss:$12 sps:$4 sm:$0xff]  }
  0x5e   :  { %v1698_v62 = vld [vmem:[#allocation8 + $0x16c] ss:$12 sps:$4 sm:$0xff]   ;;  %v1700_v1 = vld [vmem:[#allocation8 + $0xb0] ss:$12 sps:$4 sm:$0xff]   ;;  %v2016_v5 = vshrl.u32 %v95_v4, 7  ;;  %s1922_s16 = smov [#allocation11]  }
  0x5f   :  { %916 = vmatpush1.bf16.msra.mxu0 %v1643_v23  ;;  %1517 = vmatpush3.bf16.msra.mxu1 %v1675_v34  ;;  %v1703_v2 = vld [vmem:[#allocation8 + $0x184] ss:$12 sps:$4 sm:$0xff]   ;;  %v2022_v7 = vld [vmem:[%s2070_s3] sm:$0xf]  ;;  %s1370_s17 = sshll.u32 %s1922_s16, 4  ;;  %s1371_s17 = int_to_ptr.vmem [resolvable:$true] %s1370_s17 }
  0x60   :  { %917 = vmatprep.subr.bf16.mxu0 %v1648_v24  ;;  %1518 = vmatprep.subr.bf16.mxu1 %v1679_v36  ;;  %v97_v6 = vsub.s32 0, %v2016_v5  ;;  %v101_v8 = vsub.s32 1, %v2016_v5  ;;  %v109_v9 = vsub.s32 3, %v2016_v5  ;;  %v1706_v34 = vld [vmem:[#allocation8 + $0x198] ss:$12 sps:$4 sm:$0xff]   ;;  %s1879_s1 = scalar_lea.vmem %s1371_s17, 64  ;;  %p1884_p5 = scmp.lt.s32.totalorder %s1371_s17, %s1371_s17 }
  0x61   :  { %v1713_v36 = vld [vmem:[#allocation8 + $0x1b4] ss:$12 sps:$4 sm:$0xff]   ;;  %v1744_v4 = vld [vmem:[#allocation8 + $0x258] ss:$12 sps:$4 sm:$0xff]   ;;  %p1880_p4 = scmp.ne.s32.totalorder %s1371_s17, %s1879_s1  ;;  %p1885_p6 = scmp.lt.s32.totalorder %s1879_s1, %s1879_s1 }
  0x62   :  { %v98_v10 = vrot.slane %v2022_v7, %v97_v6  ;;  %v102_v11 = vrot.slane %v2022_v7, %v101_v8  ;;  %v110_v13 = vrot.slane %v2022_v7, %v109_v9  ;;  %v1747_v9 = vld [vmem:[#allocation8 + $0x270] ss:$12 sps:$4 sm:$0xff]  }
  0x63   :  { %918 = vmatpush1.bf16.msra.mxu0 %v1646_v27  ;;  %1519 = vmatpush3.bf16.msra.mxu1 %v1680_v37  ;;  %v1701_v27 = vld [vmem:[#allocation8 + $0x180] ss:$12 sps:$4 sm:$0xff]   ;;  %v1714_v37 = vld [vmem:[#allocation8 + $0x278] ss:$12 sps:$4 sm:$0xff]   ;;  %p1886_p7 = por %p1885_p6, %p1884_p5 }
  0x64   :  { %919 = vmatprep.subr.bf16.mxu0 %v1651_v28  ;;  %1520 = vmatprep.subr.bf16.mxu1 %v1684_v39  ;;  %v1705_v28 = vld [vmem:[#allocation8 + $0x188] ss:$12 sps:$4 sm:$0xff]   ;;  %v1715_v39 = vld [vmem:[#allocation8 + $0x1b8] ss:$12 sps:$4 sm:$0xff]  }
  0x65   :  { %p1887_p8 = pnand %p1886_p7, %p1880_p4 }
  0x67   :  { %920 = vmatpush1.bf16.msra.mxu0 %v1649_v31  ;;  %1521 = vmatpush3.bf16.msra.mxu1 %v1685_v41  ;;  %v1708_v31 = vld [vmem:[#allocation8 + $0x19c] ss:$12 sps:$4 sm:$0xff]  }
  0x68   :  { %921 = vmatprep.subr.bf16.mxu0 %v1654_v32  ;;  %1522 = vmatprep.subr.bf16.mxu1 %v1689_v44  ;;  %v1709_v32 = vld [vmem:[#allocation8 + $0x260] ss:$12 sps:$4 sm:$0xff]   ;;  %v1719_v41 = vld [vmem:[#allocation8 + $0x290] ss:$12 sps:$4 sm:$0xff]  }
  0x69   :  { %v1723_v44 = vld [vmem:[#allocation8 + $0x1e4] ss:$12 sps:$4 sm:$0xff]  }
  0x6b   :  { %922 = vmatpush1.bf16.msra.mxu0 %v1652_v35  ;;  %1523 = vmatpush3.bf16.msra.mxu1 %v1690_v46  ;;  %v1710_v35 = vld [vmem:[#allocation8 + $0x1a0] ss:$12 sps:$4 sm:$0xff]   ;;  %v105_v46 = vsub.s32 2, %v2016_v5  ;;  %v1783_v5 = vld [vmem:[#allocation9 + $0x90] sm:$0xff]  }
  0x6c   :  { %923 = vmatprep.subr.bf16.mxu0 %v1657_v38  ;;  %1524 = vmatprep.subr.bf16.mxu1 %v1694_v59  ;;  %v1711_v38 = vld [vmem:[#allocation8 + $0x1b0] ss:$12 sps:$4 sm:$0xff]   ;;  %v1738_v59 = vld [vmem:[#allocation8 + $0x22c] ss:$12 sps:$4 sm:$0xff]  }
  0x6f   :  { %924 = vmatpush1.bf16.msra.mxu0 %v1655_v40  ;;  %1525 = vmatpush3.bf16.msra.mxu1 %v1695_v61  ;;  %v1718_v40 = vld [vmem:[#allocation8 + $0x1cc] ss:$12 sps:$4 sm:$0xff]  }
  0x70   :  { %925 = vmatprep.subr.bf16.mxu0 %v1660_v42  ;;  %1526 = vmatprep.subr.bf16.mxu1 %v1699_v63  ;;  %v1716_v42 = vld [vmem:[#allocation8 + $0x1c8] ss:$12 sps:$4 sm:$0xff]   ;;  %v1740_v63 = vld [vmem:[#allocation8 + $0x230] ss:$12 sps:$4 sm:$0xff]  }
  0x73   :  { %926 = vmatpush1.bf16.msra.mxu0 %v1658_v43  ;;  %1527 = vmatpush3.bf16.msra.mxu1 %v1700_v1  ;;  %v1720_v43 = vld [vmem:[#allocation8 + $0x1d0] ss:$12 sps:$4 sm:$0xff]  }
  0x74   :  { %927 = vmatprep.subr.bf16.mxu0 %v1663_v45  ;;  %1534 = vmatprep.subr.bf16.mxu1 %v1704_v3  ;;  %v1724_v45 = vld [vmem:[#allocation8 + $0x2a8] ss:$12 sps:$4 sm:$0xff]  }
  0x75   :  { %v1746_v3 = vld [vmem:[#allocation8 + $0x25c] ss:$12 sps:$4 sm:$0xff]  }
  0x77   :  { %928 = vmatpush1.bf16.msra.mxu0 %v1661_v47  ;;  %v1721_v47 = vld [vmem:[#allocation8 + $0x1e0] ss:$12 sps:$4 sm:$0xff]  }
  0x78   :  { %929 = vmatprep.subr.bf16.mxu0 %v1668_v48  ;;  %v1725_v48 = vld [vmem:[#allocation8 + $0x1e8] ss:$12 sps:$4 sm:$0xff]  }
  0x7b   :  { %930 = vmatpush1.bf16.msra.mxu0 %v1666_v49  ;;  %v1728_v49 = vld [vmem:[#allocation8 + $0x1fc] ss:$12 sps:$4 sm:$0xff]  }
  0x7c   :  { %931 = vmatprep.subr.bf16.mxu0 %v1673_v50  ;;  %v1729_v50 = vld [vmem:[#allocation8 + $0x2c0] ss:$12 sps:$4 sm:$0xff]  }
  0x7f   :  { %932 = vmatpush1.bf16.msra.mxu0 %v1671_v51  ;;  %v106_v51 = vrot.slane %v2022_v7, %v105_v46  ;;  %v1749_v7 = vld [vmem:[#allocation8 + $0x274] ss:$12 sps:$4 sm:$0xff]  }
  0x80   :  { %933 = vmatprep.subr.bf16.mxu0 %v1678_v52  ;;  %v1726_v52 = vld [vmem:[#allocation8 + $0x1f8] ss:$12 sps:$4 sm:$0xff]  }
  0x83   :  { %934 = vmatpush1.bf16.msra.mxu0 %v1676_v53  ;;  %v1730_v53 = vld [vmem:[#allocation8 + $0x200] ss:$12 sps:$4 sm:$0xff]  }
  0x84   :  { %935 = vmatprep.subr.bf16.mxu0 %v1683_v54  ;;  %v1733_v54 = vld [vmem:[#allocation8 + $0x214] ss:$12 sps:$4 sm:$0xff]  }
  0x87   :  { %936 = vmatpush1.bf16.msra.mxu0 %v1681_v55  ;;  %v1734_v55 = vld [vmem:[#allocation8 + $0x2d8] ss:$12 sps:$4 sm:$0xff]  }
  0x88   :  { %937 = vmatprep.subr.bf16.mxu0 %v1688_v56 }
  0x8b   :  { %938 = vmatpush1.bf16.msra.mxu0 %v1686_v57  ;;  %v1731_v57 = vld [vmem:[#allocation8 + $0x210] ss:$12 sps:$4 sm:$0xff]  }
  0x8c   :  { %939 = vmatprep.subr.bf16.mxu0 %v1693_v58  ;;  %v1735_v58 = vld [vmem:[#allocation8 + $0x218] ss:$12 sps:$4 sm:$0xff]  }
  0x8f   :  { %940 = vmatpush1.bf16.msra.mxu0 %v1691_v60  ;;  %v1739_v60 = vld [vmem:[#allocation8 + $0x2f0] ss:$12 sps:$4 sm:$0xff]  }
  0x90   :  { %941 = vmatprep.subr.bf16.mxu0 %v1698_v62  ;;  %v1736_v62 = vld [vmem:[#allocation8 + $0x228] ss:$12 sps:$4 sm:$0xff]  }
  0x93   :  { %942 = vmatpush1.bf16.msra.mxu0 %v1696_v0  ;;  %v1743_v0 = vld [vmem:[#allocation8 + $0x244] ss:$12 sps:$4 sm:$0xff]  }
  0x94   :  { %952 = vmatprep.subr.bf16.mxu0 %v1703_v2  ;;  %v1741_v2 = vld [vmem:[#allocation8 + $0x240] ss:$12 sps:$4 sm:$0xff]  }
 0x129   :  { %v198_v12 = vpop.f32.mrb[0].mxu0  ;;  %v2033_v18 = vpop.f32.mrb[0].mxu1 }
 0x12a   :  { %v199_v14 = vadd.f32 %v198_v12, %v98_v10  ;;  %v200_v15 = vpop.f32.mrb[1].mxu0  ;;  %v241_v21 = vpop.f32.mrb[1].mxu1  ;;  %v240_v56 = vadd.f32 %v2033_v18, %v106_v51  ;;  %v1752_v10 = vld [vmem:[#allocation8 + $0x28c] ss:$12 sps:$4 sm:$0xff]   ;;  %v1755_v12 = vld [vmem:[#allocation8 + $0x2a4] ss:$12 sps:$4 sm:$0xff]  }
 0x12b   :  { %v201_v16 = vadd.f32 %v200_v15, %v102_v11  ;;  %v202_v17 = vpop.f32.mrb[2].mxu0  ;;  %v242_v23 = vadd.f32 %v241_v21, %v110_v13  ;;  %v243_v24 = vpop.f32.mrb[2].mxu1  ;;  %v1750_v11 = vld [vmem:[#allocation8 + $0x288] ss:$12 sps:$4 sm:$0xff]   ;;  %v1753_v13 = vld [vmem:[#allocation8 + $0x2a0] ss:$12 sps:$4 sm:$0xff]  }
 0x12c   :  { %v246_v19 = vmax.f32 %v199_v14, 0.0  ;;  %v203_v20 = vpop.f32.mrb[3].mxu0  ;;  %v244_v25 = vpop.f32.mrb[3].mxu1  ;;  %v248_v61 = vmax.f32 %v240_v56, 0.0  ;;  %v1758_v14 = vld [vmem:[#allocation8 + $0x2bc] ss:$12 sps:$4 sm:$0xff]  }
 0x12d   :  { %v247_v22 = vmax.f32 %v201_v16, 0.0  ;;  %v249_v29 = vmax.f32 %v242_v23, 0.0  ;;  %v1756_v15 = vld [vmem:[#allocation8 + $0x2b8] ss:$12 sps:$4 sm:$0xff]   ;;  %v1761_v16 = vld [vmem:[#allocation8 + $0x2d4] ss:$12 sps:$4 sm:$0xff]  }
 0x12e   :  { %v250_v30 = vpack.c.bf16 %v246_v19, %v246_v19  ;;  %v252_v1 = vpack.c.bf16 %v248_v61, %v248_v61  ;;  %v1759_v17 = vld [vmem:[#allocation8 + $0x2d0] ss:$12 sps:$4 sm:$0xff]   ;;  %v1764_v18 = vld [vmem:[#allocation8 + $0x2ec] ss:$12 sps:$4 sm:$0xff]   ;;  %v1762_v19 = vld [vmem:[#allocation8 + $0x2e8] ss:$12 sps:$4 sm:$0xff]  }
 0x12f   :  { %v251_v26 = vpack.c.bf16 %v247_v22, %v247_v22  ;;  %v253_v33 = vpack.c.bf16 %v249_v29, %v249_v29  ;;  %v1765_v20 = vld [vmem:[#allocation9 + $0x40] sm:$0xff]   ;;  %v1767_v22 = vld [vmem:[#allocation9 + $0x48] sm:$0xff]   ;;  %v1769_v24 = vld [vmem:[#allocation9 + $0x50] sm:$0xff]  }
 0x130   :  { %v1766_v21 = vld [vmem:[#allocation9] sm:$0xff]   ;;  %v1768_v23 = vld [vmem:[#allocation9 + $0x8] sm:$0xff]   ;;  %v1770_v25 = vld [vmem:[#allocation9 + $0x10] sm:$0xff]  }
 0x131   :  { %943 = vmatprep.mubr.bf16.mxu0 %v251_v26  ;;  %1025 = vmatprep.mubr.bf16.mxu1 %v251_v26  ;;  %v1771_v26 = vld [vmem:[#allocation9 + $0x58] sm:$0xff]   ;;  %v1774_v29 = vld [vmem:[#allocation9 + $0x20] sm:$0xff]  }
 0x132   :  { %944 = vmatmul.mubr.bf16.vlgmr.msra.gmra.mrb[4].mxu0 %v250_v30  ;;  %1026 = vmatmul.mubr.bf16.vlgmr.msra.gmra.mrb[4].mxu1 %v250_v30  ;;  %v1775_v30 = vld [vmem:[#allocation9 + $0x68] sm:$0xff]  }
 0x133   :  { %953 = vmatpush1.bf16.msra.mxu0 %v1701_v27  ;;  %1535 = vmatpush3.bf16.msra.mxu1 %v1705_v28  ;;  %v1772_v27 = vld [vmem:[#allocation9 + $0x18] sm:$0xff]   ;;  %v1773_v28 = vld [vmem:[#allocation9 + $0x60] sm:$0xff]  }
 0x134   :  { %954 = vmatprep.subr.bf16.mxu0 %v1708_v31  ;;  %1536 = vmatprep.subr.bf16.mxu1 %v1709_v32  ;;  %v1776_v31 = vld [vmem:[#allocation9 + $0x28] sm:$0xff]   ;;  %v1777_v32 = vld [vmem:[#allocation9 + $0x70] sm:$0xff]  }
 0x135   :  { %1065 = vmatprep.mubr.bf16.mxu1 %v253_v33  ;;  %984 = vmatprep.mubr.bf16.mxu0 %v253_v33  ;;  %v1778_v33 = vld [vmem:[#allocation9 + $0x30] sm:$0xff]  }
 0x137   :  { %955 = vmatpush1.bf16.msra.mxu0 %v1706_v34  ;;  %1537 = vmatpush3.bf16.msra.mxu1 %v1710_v35  ;;  %v1779_v34 = vld [vmem:[#allocation9 + $0x78] sm:$0xff]  }
 0x138   :  { %956 = vmatprep.subr.bf16.mxu0 %v1713_v36  ;;  %1538 = vmatprep.subr.bf16.mxu1 %v1714_v37  ;;  %v1780_v35 = vld [vmem:[#allocation9 + $0x38] sm:$0xff]   ;;  %v1920_v36 = vmov 0.0  }
 0x13b   :  { %957 = vmatpush1.bf16.msra.mxu0 %v1711_v38  ;;  %1539 = vmatpush3.bf16.msra.mxu1 %v1715_v39 }
 0x13c   :  { %958 = vmatprep.subr.bf16.mxu0 %v1718_v40  ;;  %1540 = vmatprep.subr.bf16.mxu1 %v1719_v41 }
 0x13f   :  { %959 = vmatpush1.bf16.msra.mxu0 %v1716_v42  ;;  %1541 = vmatpush3.bf16.msra.mxu1 %v1720_v43  ;;  %v382_v42 = vld [vmem:[%s2072_s5] sm:$0x7] }
 0x140   :  { %960 = vmatprep.subr.bf16.mxu0 %v1723_v44  ;;  %1542 = vmatprep.subr.bf16.mxu1 %v1724_v45  ;;  %v395_v43 = vrot.slane %v382_v42, %v105_v46 }
 0x143   :  { %961 = vmatpush1.bf16.msra.mxu0 %v1721_v47  ;;  %1543 = vmatpush3.bf16.msra.mxu1 %v1725_v48 }
 0x144   :  { %962 = vmatprep.subr.bf16.mxu0 %v1728_v49  ;;  %1544 = vmatprep.subr.bf16.mxu1 %v1729_v50 }
 0x147   :  { %963 = vmatpush1.bf16.msra.mxu0 %v1726_v52  ;;  %1545 = vmatpush3.bf16.msra.mxu1 %v1730_v53  ;;  %v387_v52 = vrot.slane %v382_v42, %v97_v6  ;;  %v391_v53 = vrot.slane %v382_v42, %v101_v8  ;;  %v1784_v6 = vld [vmem:[#allocation9 + $0x98] sm:$0xff]   ;;  %v1785_v8 = vld [vmem:[#allocation9 + $0xa0] sm:$0xff]  }
 0x148   :  { %964 = vmatprep.subr.bf16.mxu0 %v1733_v54  ;;  %1546 = vmatprep.subr.bf16.mxu1 %v1734_v55 }
 0x14b   :  { %965 = vmatpush1.bf16.msra.mxu0 %v1731_v57  ;;  %1547 = vmatpush3.bf16.msra.mxu1 %v1735_v58 }
 0x14c   :  { %966 = vmatprep.subr.bf16.mxu0 %v1738_v59  ;;  %1548 = vmatprep.subr.bf16.mxu1 %v1739_v60 }
 0x14f   :  { %967 = vmatpush1.bf16.msra.mxu0 %v1736_v62  ;;  %1549 = vmatpush3.bf16.msra.mxu1 %v1740_v63  ;;  %v1781_v62 = vld [vmem:[#allocation9 + $0x80] sm:$0xff]  }
 0x150   :  { %968 = vmatprep.subr.bf16.mxu0 %v1743_v0  ;;  %1556 = vmatprep.subr.bf16.mxu1 %v1765_v20  ;;  %v1782_v0 = vld [vmem:[#allocation9 + $0x88] sm:$0xff]  }
 0x152   :  { %1066 = vmatmul.mubr.bf16.vlgmr.msra.gmra.mrb[8].mxu1 %v252_v1 }
 0x153   :  { %969 = vmatpush1.bf16.msra.mxu0 %v1741_v2  ;;  %1557 = vmatpush3.bf16.msra.mxu1 %v1766_v21  ;;  %v1787_v2 = vld [vmem:[#allocation9 + $0xb0] sm:$0xff]   ;;  %v1360_v21 = vstv %s2067_s0 }
 0x154   :  { %970 = vmatprep.subr.bf16.mxu0 %v1746_v3  ;;  %1558 = vmatprep.subr.bf16.mxu1 %v1767_v22  ;;  %v1788_v3 = vld [vmem:[#allocation9 + $0xb8] sm:$0xff]  }
 0x157   :  { %971 = vmatpush1.bf16.msra.mxu0 %v1744_v4  ;;  %1559 = vmatpush3.bf16.msra.mxu1 %v1768_v23 }
 0x158   :  { %972 = vmatprep.subr.bf16.mxu0 %v1749_v7  ;;  %1560 = vmatprep.subr.bf16.mxu1 %v1769_v24 }
 0x15b   :  { %973 = vmatpush1.bf16.msra.mxu0 %v1747_v9  ;;  %1561 = vmatpush3.bf16.msra.mxu1 %v1770_v25 }
 0x15c   :  { %974 = vmatprep.subr.bf16.mxu0 %v1752_v10  ;;  %1562 = vmatprep.subr.bf16.mxu1 %v1771_v26 }
 0x15f   :  { %975 = vmatpush1.bf16.msra.mxu0 %v1750_v11  ;;  %1563 = vmatpush3.bf16.msra.mxu1 %v1772_v27 }
 0x160   :  { %976 = vmatprep.subr.bf16.mxu0 %v1755_v12  ;;  %1564 = vmatprep.subr.bf16.mxu1 %v1773_v28 }
 0x163   :  { %977 = vmatpush1.bf16.msra.mxu0 %v1753_v13  ;;  %1565 = vmatpush3.bf16.msra.mxu1 %v1774_v29 }
 0x164   :  { %978 = vmatprep.subr.bf16.mxu0 %v1758_v14  ;;  %1566 = vmatprep.subr.bf16.mxu1 %v1775_v30  ;;  %v1487_v14 = vld [vmem:[%s2074_s7] ss:$0 sm:$0xff] }
 0x167   :  { %979 = vmatpush1.bf16.msra.mxu0 %v1756_v15  ;;  %1567 = vmatpush3.bf16.msra.mxu1 %v1776_v31 }
 0x168   :  { %980 = vmatprep.subr.bf16.mxu0 %v1761_v16  ;;  %1568 = vmatprep.subr.bf16.mxu1 %v1777_v32 }
 0x16b   :  { %981 = vmatpush1.bf16.msra.mxu0 %v1759_v17  ;;  %1569 = vmatpush3.bf16.msra.mxu1 %v1778_v33 }
 0x16c   :  { %982 = vmatprep.subr.bf16.mxu0 %v1764_v18  ;;  %1570 = vmatprep.subr.bf16.mxu1 %v1779_v34 }
 0x16f   :  { %983 = vmatpush1.bf16.msra.mxu0 %v1762_v19  ;;  %1571 = vmatpush3.bf16.msra.mxu1 %v1780_v35 }
 0x170   :  { %1587 = vmatprep.subr.bf16.mxu1 %v1920_v36 }
 0x172   :  { %985 = vmatmul.mubr.bf16.vlgmr.msra.gmra.mrb[4].mxu0 %v252_v1  ;;  %v1786_v1 = vld [vmem:[#allocation9 + $0xa8] sm:$0xff]  }
 0x205   :  { %v1528_v37 = vpop.f32.mrb[4].mxu1 }
 0x206   :  { %v1529_v38 = vpop.f32.mrb[5].mxu1 }
 0x207   :  { %v1530_v39 = vadd.f32 %v1529_v38, %v1528_v37  ;;  %v1531_v40 = vpop.f32.mrb[6].mxu1 }
 0x208   :  { %v1532_v41 = vpop.f32.mrb[7].mxu1 }
 0x209   :  { %v1028_v47 = vadd.f32 %v1530_v39, %v395_v43 }
 0x225   :  { %v1550_v44 = vpop.f32.mrb[8].mxu1 }
 0x226   :  { %v1551_v45 = vpop.f32.mrb[9].mxu1 }
 0x227   :  { %v1552_v48 = vadd.f32 %v1551_v45, %v1550_v44  ;;  %v1553_v49 = vpop.f32.mrb[10].mxu1 }
 0x228   :  { %v1554_v50 = vpop.f32.mrb[11].mxu1 }
 0x229   :  { %v1068_v51 = vadd.f32 %v1552_v48, %v1028_v47 }
 0x22b   :  { %v1075_v4 = vmax.f32 %v1068_v51, 0.0 }
 0x22d   :  { %v1078_v7 = vpack.c.bf16 %v1075_v4, %v1075_v4 }
 0x245   :  { %v986_v54 = vpop.f32.mrb[4].mxu0 }
 0x246   :  { %v1607_v55 = vadd.f32 %v986_v54, %v387_v52  ;;  %v988_v56 = vpop.f32.mrb[5].mxu0 }
 0x247   :  { %v1608_v57 = vadd.f32 %v988_v56, %v391_v53  ;;  %v990_v58 = vpop.f32.mrb[6].mxu0 }
 0x248   :  { %v1073_v59 = vmax.f32 %v1607_v55, 0.0  ;;  %v991_v46 = vpop.f32.mrb[7].mxu0 }
 0x249   :  { %v1074_v60 = vmax.f32 %v1608_v57, 0.0 }
 0x24a   :  { %v1076_v63 = vpack.c.bf16 %v1073_v59, %v1073_v59 }
 0x24b   :  { %v1077_v61 = vpack.c.bf16 %v1074_v60, %v1074_v60 }
 0x24d   :  { %1311 = vmatprep.mubr.bf16.mxu1 %v1077_v61 }
 0x24e   :  { %1312 = vmatmul.mubr.bf16.vlgmr.msra.gmra.mrb[12].mxu1 %v1076_v63 }
 0x24f   :  { %1588 = vmatpush3.bf16.msra.mxu1 %v1781_v62  ;;  %1603 = vmatprep.mubr.msk.bf16.mxu1 %vm1921_vm2, %v1920_v36 }
 0x250   :  { %1589 = vmatprep.subr.bf16.mxu1 %v1920_v36 }
 0x253   :  { %1590 = vmatpush3.bf16.msra.mxu1 %v1782_v0 }
 0x254   :  { %1591 = vmatprep.subr.bf16.mxu1 %v1920_v36 }
 0x257   :  { %1592 = vmatpush3.bf16.msra.mxu1 %v1783_v5 }
 0x258   :  { %1593 = vmatprep.subr.bf16.mxu1 %v1920_v36 }
 0x25b   :  { %1594 = vmatpush3.bf16.msra.mxu1 %v1784_v6 }
 0x25c   :  { %1595 = vmatprep.subr.bf16.mxu1 %v1920_v36 }
 0x25f   :  { %1596 = vmatpush3.bf16.msra.mxu1 %v1785_v8 }
 0x260   :  { %1597 = vmatprep.subr.bf16.mxu1 %v1920_v36 }
 0x263   :  { %1598 = vmatpush3.bf16.msra.mxu1 %v1786_v1 }
 0x264   :  { %1599 = vmatprep.subr.bf16.mxu1 %v1920_v36 }
 0x267   :  { %1600 = vmatpush3.bf16.msra.mxu1 %v1787_v2 }
 0x268   :  { %1601 = vmatprep.subr.bf16.mxu1 %v1920_v36 }
 0x26b   :  { %1602 = vmatpush3.bf16.msra.mxu1 %v1788_v3 }
 0x26e   :  { %1604 = vmatmul.mubr.bf16.vlgmr.msra.gmra.mrb[16].mxu1 %v1078_v7 }
 0x321   :  { %v1572_v9 = vpop.f32.mrb[12].mxu1 }
 0x322   :  { %v1573_v10 = vpop.f32.mrb[13].mxu1 }
 0x323   :  { %v1574_v11 = vadd.f32 %v1573_v10, %v1572_v9  ;;  %v1575_v12 = vpop.f32.mrb[14].mxu1 }
 0x324   :  { %v1576_v13 = vpop.f32.mrb[15].mxu1 }
 0x325   :  { %v1314_v15 = vadd.f32 %v1574_v11, %v1487_v14 }
 0x341   :  { %v1353_v16 = vpop.f32.mrb[16].mxu1 }
 0x342   :  { %v1354_v17 = vadd.f32 %v1353_v16, %v1314_v15  ;;  %v1605_v18 = vpop.f32.mrb[17].mxu1 }
 0x343   :  { %v1356_v19 = vpop.f32.mrb[18].mxu1 }
 0x344   :  { %1789 = vtanh.f32 %v1354_v17  ;;  %v1606_v20 = vpop.f32.mrb[19].mxu1 }
 0x34e   :  { %v1790_v22 = vpop.eup %1789 }
 0x34f   :  { %v1361_v23 = vmul.f32 %v1790_v22, %v1360_v21 }
 0x351   :  { %v1362_v24 = vpack.c.bf16 %v1361_v23, %v1361_v23 }
 0x353   :  { %1363 = vst [vmem:[#allocation11] sm:$0xf] %v1362_v24 }
 0x354   :  { %1890 = shalt.err (!%p1887_p8)
}
 0x355   :  { %s1891_s19 = scalar_lea.hbm %s2075_s8, 64 }
 0x356   :  { %p1892_p9 = scmp.ne.s32.totalorder %s2075_s8, %s1891_s19  ;;  %p1895_p10 = scmp.lt.u32.totalorder %s1891_s19, %s2075_s8 }
 0x358   :  { %p1897_p11 = pnand %p1895_p10, %p1892_p9 }
 0x35a   :  { %1900 = shalt.err (!%p1897_p11)
}
 0x35b   :  { %1373 = dma.vmem_to_hbm [thread:$0]  %s1371_s17, 64, %s2075_s8, [#allocation5]  }
 0x35c   :  { %1907 = dma.done.wait [#allocation5], 64  }
 0x35d   :  { %1908 = vsyncadd [#allocation5], 4294967232 }
 0x35e   :  { %1377 = vsyncpa [#allocation4], 1 }
 0x35f   :  { %1378 = vsyncpa [#allocation7], 1 }
 0x360   :  { %1379 = vsyncpa [#allocation10], 1 }
 0x361   :  { %1380 = vsyncpa [#allocation5], 1 }

</bundles_post_ra>
